<compile_context>
chip_gen: v7x
topology: tpu7x:2x2x1
jax: 0.10.0
libtpu: 0.0.40
codegen_flags: <defaults>
</compile_context>

<pallas_src>
import functools
import math

import jax
import jax.numpy as jnp
from jax import lax
from jax.experimental import pallas as pl
from jax.experimental.pallas import tpu as pltpu


def _round_up(n, m):
    return ((n + m - 1) // m) * m


def _sublane_tile(dtype):
    # Native second-minor (sublane) tile rows: 8 for 32-bit, 16 for bf16, 32 for int8/fp8.
    return max(8, 32 // jnp.dtype(dtype).itemsize)


def _auto_batch_block(batch, per_elem_bytes, *, budget_bytes=4 << 20, max_tb=8):
    """Largest divisor of `batch` (<= max_tb) whose block fits the per-step activation budget
    while still leaving >= 2 grid steps when batch >= 2 (v7x has 2 TensorCores)."""
    best = 1
    for tb in range(1, min(batch, max_tb) + 1):
        if batch % tb:
            continue
        if tb * per_elem_bytes > budget_bytes:
            continue
        if batch >= 2 and batch // tb < 2:
            continue
        best = tb
    return best


def _conv_block_kernel(*refs, n_taps, true_len, batch_block,
                       identity_residual, compute_dtype):
    """Processes a (batch_block, Cin_p, Lp) activation block, channels-first [C, L]
    (sequence on the 128-wide lane axis -> lane-dense stores, wide MXU N dim).

    refs (identity residual):  x, w1f, b1, w2f, b2, gamma, beta, out
    refs (projected residual): x, w1f, b1, w2f, b2, wr, br, gamma, beta, out

      x_ref   : (TB, Cin_p, Lp)   tail columns >= true_len are zero (wrapper pad)
      w1f_ref : (Mid_p, K*Cin_p)  fused (im2col) conv1 weight
      w2f_ref : (Cout, K*Mid_p)   fused (im2col) conv2 weight
      wr_ref  : (Cout, Cin_p)     1x1 residual projection (only when Cin != Cout)
      b1/b2/br/gamma/beta : (rows, 1) f32 column vectors
      o_ref   : (TB, Cout, Lp)
    """
    if identity_residual:
        (x_ref, w1_ref, b1_ref, w2_ref, b2_ref, g_ref, bt_ref, o_ref) = refs
        wr_ref = br_ref = None
    else:
        (x_ref, w1_ref, b1_ref, w2_ref, b2_ref, wr_ref, br_ref,
         g_ref, bt_ref, o_ref) = refs

    lp = x_ref.shape[-1]
    cout = o_ref.shape[1]
    pad = n_taps // 2
    offsets = [k - pad for k in range(n_taps)]
    zero_tail = lp - true_len            # wrapper guarantees columns >= true_len are zero

    # ---- masks: built ONCE as (1, Lp) vectors, reused by both convs & all batch elems ----
    cols = lax.broadcasted_iota(jnp.int32, (1, lp), 1)
    tap_masks = {}
    if zero_tail < pad:                  # not enough zero slack -> explicit edge masks
        for off in offsets:
            if off != 0:
                tap_masks[off] = ((cols + off) >= 0) & ((cols + off) < true_len)
    # One tail-zero select on h1 is all conv2 needs when the lane padding >= conv halo.
    tail_mask = (cols < true_len) if (zero_tail > 0 and pad > 0) else None

    def im2col(v):
        """Stack the K lane-shifted copies of v along the channel (sublane) axis.
        Shifts are in-register XLU rolls; padding handled by the hoisted (1, Lp) masks."""
        parts = []
        for off in offsets:
            p = v if off == 0 else pltpu.roll(v, shift=(-off) % lp, axis=1)
            m = tap_masks.get(off)
            if m is not None:
                p = jnp.where(m, p, jnp.zeros_like(p))
            parts.append(p)
        return parts[0] if len(parts) == 1 else jnp.concatenate(parts, axis=0)

    w1f = w1_ref[...]
    w2f = w2_ref[...]
    b1 = b1_ref[...]
    b2 = b2_ref[...]
    gamma = g_ref[...]
    beta = bt_ref[...]
    wr = None if identity_residual else wr_ref[...]
    br = None if identity_residual else br_ref[...]

    # Small static batch loop (batch_block is capped <= 8 by the wrapper).
    # TODO(synk): switch to lax.fori_loop if batch_block is ever raised above ~8.
    for b in range(batch_block):
        x = x_ref[b]                                         # (Cin_p, Lp), input dtype

        # ---- conv1: all K taps fused into ONE MXU matmul ----
        xs = im2col(x).astype(compute_dtype)                 # (K*Cin_p, Lp)
        h1 = jnp.dot(w1f, xs, preferred_element_type=jnp.float32) + b1
        h1 = jnp.maximum(h1, 0.0)                            # (Mid_p, Lp), f32
        # dropout: inference-mode identity.
        if tail_mask is not None:                            # enforce conv2 zero padding
            h1 = jnp.where(tail_mask, h1, jnp.zeros_like(h1))

        # ---- conv2: fused the same way ----
        hs = im2col(h1).astype(compute_dtype)                # (K*Mid_p, Lp)
        h2 = jnp.dot(w2f, hs, preferred_element_type=jnp.float32) + b2
        h2 = jnp.maximum(h2, 0.0)                            # (Cout, Lp), f32

        # ---- residual: identity (no matmul / weight DMA) or 1x1 projection ----
        if identity_residual:
            res = x[:cout].astype(jnp.float32)
        else:
            res = jnp.dot(wr, x.astype(compute_dtype),
                          preferred_element_type=jnp.float32) + br
        y = h2 + res

        # ---- LayerNorm over channels (sublane axis), eps=1e-5; gamma folded into scale ----
        mean = jnp.mean(y, axis=0, keepdims=True)
        var = jnp.mean(jnp.square(y - mean), axis=0, keepdims=True)
        scale = gamma * lax.rsqrt(var + 1e-5)
        o_ref[b] = ((y - mean) * scale + beta).astype(o_ref.dtype)


def enhanced_conv_block(x, params, *, compute_dtype=jnp.bfloat16,
                        lane_multiple=128, batch_block=None):
    """x: [B, C_in, L] -> [B, C_out, L] (same NCL convention as the PyTorch module).

    compute_dtype controls the MXU-operand dtype only (accumulation, bias/ReLU and
    LayerNorm math stay f32).  Pass jnp.float32 to reproduce the PyTorch f32 forward.
    lane_multiple=128 minimizes padding; 256 fills the v6e/v7x MXU N dim for long L.
    """
    w1, b1, w2, b2, wr, br, gamma, beta = params
    B, cin, L = x.shape
    K, mid, _ = w1.shape
    cout = w2.shape[1]
    identity_residual = wr is None
    assert K % 2 == 1, "even kernel_size changes seq length in the torch module; unsupported"
    pad = K // 2
    in_dt = x.dtype

    # Lane padding keeps L on the 128-wide lane axis (lane-dense stores); >= pad zero
    # columns also let the kernel drop all per-tap edge masks.
    Lp = _round_up(max(L, lane_multiple), lane_multiple)
    # Channel padding to the sublane tile keeps the in-kernel im2col concat tile-aligned
    # (zero cost when channels are already aligned, which is the common real case).
    cin_p = _round_up(cin, _sublane_tile(in_dt))
    mid_p = _round_up(mid, 8)            # h1 is held in f32 -> 8-row tile

    x_in = x if (cin_p == cin and Lp == L) else \
        jnp.pad(x, ((0, 0), (0, cin_p - cin), (0, Lp - L)))

    def pack_conv(w, rows_p, cols_p):
        # (K, Cout, Cin) torch-style tap weights -> fused im2col weight (rows_p, K*cols_p).
        k, co, ci = w.shape
        wp = jnp.zeros((k, rows_p, cols_p), w.dtype).at[:, :co, :ci].set(w)
        return jnp.transpose(wp, (1, 0, 2)).reshape(rows_p, k * cols_p)

    w1f = pack_conv(w1, mid_p, cin_p).astype(compute_dtype)
    w2f = pack_conv(w2, cout, mid_p).astype(compute_dtype)
    b1_ = jnp.zeros((mid_p, 1), jnp.float32).at[:mid, 0].set(b1.astype(jnp.float32))
    b2_ = b2.reshape(cout, 1).astype(jnp.float32)
    g_ = gamma.reshape(cout, 1).astype(jnp.float32)
    bt_ = beta.reshape(cout, 1).astype(jnp.float32)

    in_e = jnp.dtype(in_dt).itemsize
    cd_e = jnp.dtype(compute_dtype).itemsize

    # Per-batch-element bytes: double-buffered in/out blocks + f32/compute intermediates.
    per_elem = Lp * (2 * (cin_p + cout) * in_e
                     + (K * cin_p + K * mid_p) * (4 + cd_e)
                     + (mid_p + 3 * cout) * 4)
    TB = _auto_batch_block(B, per_elem) if batch_block is None else batch_block
    assert B % TB == 0, "batch_block must divide the batch size"

    operands = [x_in, w1f, b1_, w2f, b2_]
    in_specs = [
        pl.BlockSpec((TB, cin_p, Lp), lambda b: (b, 0, 0)),
        pl.BlockSpec((mid_p, K * cin_p), lambda b: (0, 0)),
        pl.BlockSpec((mid_p, 1), lambda b: (0, 0)),
        pl.BlockSpec((cout, K * mid_p), lambda b: (0, 0)),
        pl.BlockSpec((cout, 1), lambda b: (0, 0)),
    ]
    if not identity_residual:
        wr_p = jnp.zeros((cout, cin_p), wr.dtype).at[:, :cin].set(wr).astype(compute_dtype)
        operands += [wr_p, br.reshape(cout, 1).astype(jnp.float32)]
        in_specs += [pl.BlockSpec((cout, cin_p), lambda b: (0, 0)),
                     pl.BlockSpec((cout, 1), lambda b: (0, 0))]
    operands += [g_, bt_]
    in_specs += [pl.BlockSpec((cout, 1), lambda b: (0, 0)),
                 pl.BlockSpec((cout, 1), lambda b: (0, 0))]

    kernel = functools.partial(
        _conv_block_kernel, n_taps=K, true_len=L, batch_block=TB,
        identity_residual=identity_residual, compute_dtype=compute_dtype)

    # VMEM budget: in/out blocks at their TRUE dtype x double buffering, weights x2
    # (default pipelining), plus the f32/compute-dtype intermediates of one iteration.
    nres = 0 if identity_residual else 1
    io_bytes = 2 * TB * Lp * (cin_p + cout) * in_e
    wgt_bytes = 2 * ((K * mid_p * cin_p + K * cout * mid_p + nres * cout * cin_p) * cd_e
                     + (mid_p + (3 + nres) * cout) * 4)
    inter_bytes = Lp * (K * cin_p * (in_e + cd_e) + K * mid_p * (4 + cd_e)
                        + mid_p * 4 + 3 * cout * 4)
    need = io_bytes + wgt_bytes + inter_bytes
    vmem_limit = int(min(max(int(1.3 * need) + (2 << 20), 16 << 20), 64 << 20))

    out = pl.pallas_call(
        kernel,
        out_shape=jax.ShapeDtypeStruct((B, cout, Lp), in_dt),
        grid_spec=pltpu.PrefetchScalarGridSpec(
            num_scalar_prefetch=0,
            grid=(B // TB,),
            in_specs=in_specs,
            out_specs=pl.BlockSpec((TB, cout, Lp), lambda b: (b, 0, 0)),
        ),
        compiler_params=pltpu.CompilerParams(
            dimension_semantics=("parallel",),
            vmem_limit_bytes=vmem_limit),
    )(*operands)

    return out if Lp == L else out[:, :, :L]


def init_params(key, in_channels, out_channels, kernel_size=3):
    """Mirrors the module's _init_weights().  Conv weights stored as [K, Cout, Cin]
    (PyTorch's [Cout, Cin, K] with K moved to the front)."""
    mid = max(in_channels, out_channels)
    k1, k2, k3 = jax.random.split(key, 3)

    # kaiming normal, mode='fan_out', relu -> std = sqrt(2 / (out_ch * K))
    std1 = math.sqrt(2.0 / (mid * kernel_size))
    w1 = jax.random.normal(k1, (kernel_size, mid, in_channels), jnp.float32) * std1
    b1 = jnp.zeros((mid,), jnp.float32)

    std2 = math.sqrt(2.0 / (out_channels * kernel_size))
    w2 = jax.random.normal(k2, (kernel_size, out_channels, mid), jnp.float32) * std2
    b2 = jnp.zeros((out_channels,), jnp.float32)

    if in_channels != out_channels:
        stdr = math.sqrt(1.0 / out_channels)   # kaiming fan_out, linear
        wr = jax.random.normal(k3, (out_channels, in_channels), jnp.float32) * stdr
        br = jnp.zeros((out_channels,), jnp.float32)
    else:
        wr = None   # nn.Identity residual -> no projection matmul / weight DMA
        br = None

    gamma = jnp.ones((out_channels,), jnp.float32)
    beta = jnp.zeros((out_channels,), jnp.float32)
    return (w1, b1, w2, b2, wr, br, gamma, beta)


def reference(x, params):
    """Pure-JAX reference (same math as the PyTorch forward, eval mode), NCL layout."""
    w1, b1, w2, b2, wr, br, gamma, beta = params
    K = w1.shape[0]
    pad = K // 2
    L = x.shape[2]
    hi = jax.lax.Precision.HIGHEST

    xp = jnp.pad(x, ((0, 0), (0, 0), (pad, pad)))
    h1 = sum(jnp.einsum('mc,bcl->bml', w1[k], xp[:, :, k:k + L], precision=hi)
             for k in range(K)) + b1[None, :, None]
    h1 = jnp.maximum(h1, 0.0)
    h1p = jnp.pad(h1, ((0, 0), (0, 0), (pad, pad)))
    h2 = sum(jnp.einsum('om,bml->bol', w2[k], h1p[:, :, k:k + L], precision=hi)
             for k in range(K)) + b2[None, :, None]
    h2 = jnp.maximum(h2, 0.0)
    if wr is None:
        res = x
    else:
        res = jnp.einsum('oc,bcl->bol', wr, x, precision=hi) + br[None, :, None]
    y = h2 + res
    mean = y.mean(axis=1, keepdims=True)
    var = ((y - mean) ** 2).mean(axis=1, keepdims=True)
    yn = (y - mean) / jnp.sqrt(var + 1e-5)
    return yn * gamma[None, :, None] + beta[None, :, None]


if __name__ == "__main__":
    key = jax.random.PRNGKey(0)
    kx, kp1, kp2, kp3 = jax.random.split(key, 4)

    # Config 1: Cin != Cout -> 1x1 residual projection; L=128 is lane-aligned (no lane pad).
    B, C_IN, C_OUT, L = 2, 4, 8, 128
    x = jax.random.normal(kx, (B, C_IN, L), jnp.float32)
    params = init_params(kp1, C_IN, C_OUT, kernel_size=3)
    y_ref = reference(x, params)

    y = jax.block_until_ready(enhanced_conv_block(x, params, compute_dtype=jnp.float32))
    assert y.shape == (B, C_OUT, L)
    assert jnp.allclose(y, y_ref, atol=1e-4, rtol=1e-4), "f32 mismatch (projected residual)"

    # Default bf16 MXU path (f32 accumulation + f32 LayerNorm): bounded deviation from f32.
    yb = jax.block_until_ready(enhanced_conv_block(x, params))
    err = jnp.abs(yb.astype(jnp.float32) - y_ref)
    assert float(err.max()) < 0.2 and float(err.mean()) < 0.04, "bf16 path off"

    # Config 2: Cin == Cout -> identity residual (no projection matmul / weight DMA).
    x2 = jax.random.normal(kx, (B, C_OUT, L), jnp.float32)
    params2 = init_params(kp2, C_OUT, C_OUT, kernel_size=3)
    y2 = jax.block_until_ready(enhanced_conv_block(x2, params2, compute_dtype=jnp.float32))
    assert jnp.allclose(y2, reference(x2, params2), atol=1e-4, rtol=1e-4), \
        "f32 mismatch (identity residual)"

    # Config 3: B=4 (auto batch_block=2, grid=2) and L=96 (lane-padded tail -> the
    # mask-free tap path + tail-zero select + output slice are exercised).
    B3, C3, L3 = 4, 8, 96
    x3 = jax.random.normal(kp3, (B3, C3, L3), jnp.float32)
    params3 = init_params(kp2, C3, C3, kernel_size=3)
    y3 = jax.block_until_ready(enhanced_conv_block(x3, params3, compute_dtype=jnp.float32))
    assert y3.shape == (B3, C3, L3)
    assert jnp.allclose(y3, reference(x3, params3), atol=1e-4, rtol=1e-4), \
        "f32 mismatch (batch-blocked, lane-padded)"

    print("KERNEL_OK")
</pallas_src>

<mosaic_0001>
module attributes {stable_mosaic.version = 11 : i64} {
  func.func @_conv_block_kernel(%arg0: i32, %arg1: memref<1x8x128xf32, #tpu.memory_space<vmem>>, %arg2: memref<8x24xf32, #tpu.memory_space<vmem>>, %arg3: memref<8x1xf32, #tpu.memory_space<vmem>>, %arg4: memref<8x24xf32, #tpu.memory_space<vmem>>, %arg5: memref<8x1xf32, #tpu.memory_space<vmem>>, %arg6: memref<8x8xf32, #tpu.memory_space<vmem>>, %arg7: memref<8x1xf32, #tpu.memory_space<vmem>>, %arg8: memref<8x1xf32, #tpu.memory_space<vmem>>, %arg9: memref<8x1xf32, #tpu.memory_space<vmem>>, %arg10: memref<1x8x128xf32, #tpu.memory_space<vmem>>) attributes {dimension_semantics = [#tpu.dimension_semantics<parallel>], iteration_bounds = array<i64: 2>, scalar_prefetch = 0 : i64, scratch_operands = 0 : i64, tpu.core_type = #tpu.core_type<tc>, window_params = [{transform_indices = @transform_0, window_bounds = array<i64: 1, 8, 128>}, {pipeline_mode = #tpu.pipeline_mode<synchronous>, transform_indices = @transform_1, window_bounds = array<i64: 8, 24>}, {pipeline_mode = #tpu.pipeline_mode<synchronous>, transform_indices = @transform_2, window_bounds = array<i64: 8, 1>}, {pipeline_mode = #tpu.pipeline_mode<synchronous>, transform_indices = @transform_3, window_bounds = array<i64: 8, 24>}, {pipeline_mode = #tpu.pipeline_mode<synchronous>, transform_indices = @transform_4, window_bounds = array<i64: 8, 1>}, {pipeline_mode = #tpu.pipeline_mode<synchronous>, transform_indices = @transform_5, window_bounds = array<i64: 8, 8>}, {pipeline_mode = #tpu.pipeline_mode<synchronous>, transform_indices = @transform_6, window_bounds = array<i64: 8, 1>}, {pipeline_mode = #tpu.pipeline_mode<synchronous>, transform_indices = @transform_7, window_bounds = array<i64: 8, 1>}, {pipeline_mode = #tpu.pipeline_mode<synchronous>, transform_indices = @transform_8, window_bounds = array<i64: 8, 1>}, {transform_indices = @transform_9, window_bounds = array<i64: 1, 8, 128>}]} {
    %0 = tpu.iota {dimensions = array<i32: 1>} : vector<1x128xi32>
    %c-1_i32 = arith.constant -1 : i32
    %1 = vector.broadcast %c-1_i32 : i32 to vector<1x128xi32>
    %2 = arith.addi %0, %1 : vector<1x128xi32>
    %c0_i32 = arith.constant 0 : i32
    %3 = vector.broadcast %c0_i32 : i32 to vector<1x128xi32>
    %4 = arith.cmpi sge, %2, %3 : vector<1x128xi32>
    %c-1_i32_0 = arith.constant -1 : i32
    %5 = vector.broadcast %c-1_i32_0 : i32 to vector<1x128xi32>
    %6 = arith.addi %0, %5 : vector<1x128xi32>
    %c128_i32 = arith.constant 128 : i32
    %7 = vector.broadcast %c128_i32 : i32 to vector<1x128xi32>
    %8 = arith.cmpi slt, %6, %7 : vector<1x128xi32>
    %9 = arith.andi %4, %8 : vector<1x128xi1>
    %c1_i32 = arith.constant 1 : i32
    %10 = vector.broadcast %c1_i32 : i32 to vector<1x128xi32>
    %11 = arith.addi %0, %10 : vector<1x128xi32>
    %c0_i32_1 = arith.constant 0 : i32
    %12 = vector.broadcast %c0_i32_1 : i32 to vector<1x128xi32>
    %13 = arith.cmpi sge, %11, %12 : vector<1x128xi32>
    %c1_i32_2 = arith.constant 1 : i32
    %14 = vector.broadcast %c1_i32_2 : i32 to vector<1x128xi32>
    %15 = arith.addi %0, %14 : vector<1x128xi32>
    %c128_i32_3 = arith.constant 128 : i32
    %16 = vector.broadcast %c128_i32_3 : i32 to vector<1x128xi32>
    %17 = arith.cmpi slt, %15, %16 : vector<1x128xi32>
    %18 = arith.andi %13, %17 : vector<1x128xi1>
    %c0 = arith.constant 0 : index
    %c0_4 = arith.constant 0 : index
    %19 = vector.load %arg2[%c0, %c0_4] : memref<8x24xf32, #tpu.memory_space<vmem>>, vector<8x24xf32>
    %c0_5 = arith.constant 0 : index
    %c0_6 = arith.constant 0 : index
    %20 = vector.load %arg4[%c0_5, %c0_6] : memref<8x24xf32, #tpu.memory_space<vmem>>, vector<8x24xf32>
    %c0_7 = arith.constant 0 : index
    %c0_8 = arith.constant 0 : index
    %21 = vector.load %arg3[%c0_7, %c0_8] : memref<8x1xf32, #tpu.memory_space<vmem>>, vector<8x1xf32>
    %c0_9 = arith.constant 0 : index
    %c0_10 = arith.constant 0 : index
    %22 = vector.load %arg5[%c0_9, %c0_10] : memref<8x1xf32, #tpu.memory_space<vmem>>, vector<8x1xf32>
    %c0_11 = arith.constant 0 : index
    %c0_12 = arith.constant 0 : index
    %23 = vector.load %arg8[%c0_11, %c0_12] : memref<8x1xf32, #tpu.memory_space<vmem>>, vector<8x1xf32>
    %c0_13 = arith.constant 0 : index
    %c0_14 = arith.constant 0 : index
    %24 = vector.load %arg9[%c0_13, %c0_14] : memref<8x1xf32, #tpu.memory_space<vmem>>, vector<8x1xf32>
    %c0_15 = arith.constant 0 : index
    %c0_16 = arith.constant 0 : index
    %25 = vector.load %arg6[%c0_15, %c0_16] : memref<8x8xf32, #tpu.memory_space<vmem>>, vector<8x8xf32>
    %c0_17 = arith.constant 0 : index
    %c0_18 = arith.constant 0 : index
    %26 = vector.load %arg7[%c0_17, %c0_18] : memref<8x1xf32, #tpu.memory_space<vmem>>, vector<8x1xf32>
    %c0_19 = arith.constant 0 : index
    %c0_20 = arith.constant 0 : index
    %c0_21 = arith.constant 0 : index
    %27 = vector.load %arg1[%c0_19, %c0_20, %c0_21] : memref<1x8x128xf32, #tpu.memory_space<vmem>>, vector<1x8x128xf32>
    %28 = vector.shape_cast %27 : vector<1x8x128xf32> to vector<8x128xf32>
    %c1_i32_22 = arith.constant 1 : i32
    %29 = tpu.dynamic_rotate %28 by %c1_i32_22 dim 1 : vector<8x128xf32>, i32 -> vector<8x128xf32>
    %cst = arith.constant 0.000000e+00 : f32
    %30 = vector.broadcast %cst : f32 to vector<8x128xf32>
    %31 = vector.shape_cast %9 : vector<1x128xi1> to vector<1x128xi1>
    %32 = vector.broadcast %31 : vector<1x128xi1> to vector<8x128xi1>
    %33 = arith.select %32, %29, %30 : vector<8x128xi1>, vector<8x128xf32>
    %c127_i32 = arith.constant 127 : i32
    %34 = tpu.dynamic_rotate %28 by %c127_i32 dim 1 : vector<8x128xf32>, i32 -> vector<8x128xf32>
    %cst_23 = arith.constant 0.000000e+00 : f32
    %35 = vector.broadcast %cst_23 : f32 to vector<8x128xf32>
    %36 = vector.shape_cast %18 : vector<1x128xi1> to vector<1x128xi1>
    %37 = vector.broadcast %36 : vector<1x128xi1> to vector<8x128xi1>
    %38 = arith.select %37, %34, %35 : vector<8x128xi1>, vector<8x128xf32>
    %39 = tpu.concatenate %33, %28, %38 in 0 : vector<8x128xf32>, vector<8x128xf32>, vector<8x128xf32> -> vector<24x128xf32>
    %cst_24 = arith.constant dense<0.000000e+00> : vector<8x128xf32>
    %40 = tpu.matmul %19, %39, %cst_24 {dimension_numbers = #tpu.dot_dimension_numbers<[1], [0], [0], [1], [0, 0, 1, 1], [], []>} : vector<8x24xf32>, vector<24x128xf32>, vector<8x128xf32> -> vector<8x128xf32>
    %41 = vector.broadcast %21 : vector<8x1xf32> to vector<8x128xf32>
    %42 = arith.addf %40, %41 : vector<8x128xf32>
    %cst_25 = arith.constant 0.000000e+00 : f32
    %43 = vector.broadcast %cst_25 : f32 to vector<8x128xf32>
    %44 = arith.maximumf %42, %43 : vector<8x128xf32>
    %c1_i32_26 = arith.constant 1 : i32
    %45 = tpu.dynamic_rotate %44 by %c1_i32_26 dim 1 : vector<8x128xf32>, i32 -> vector<8x128xf32>
    %cst_27 = arith.constant 0.000000e+00 : f32
    %46 = vector.broadcast %cst_27 : f32 to vector<8x128xf32>
    %47 = vector.shape_cast %9 : vector<1x128xi1> to vector<1x128xi1>
    %48 = vector.broadcast %47 : vector<1x128xi1> to vector<8x128xi1>
    %49 = arith.select %48, %45, %46 : vector<8x128xi1>, vector<8x128xf32>
    %c127_i32_28 = arith.constant 127 : i32
    %50 = tpu.dynamic_rotate %44 by %c127_i32_28 dim 1 : vector<8x128xf32>, i32 -> vector<8x128xf32>
    %cst_29 = arith.constant 0.000000e+00 : f32
    %51 = vector.broadcast %cst_29 : f32 to vector<8x128xf32>
    %52 = vector.shape_cast %18 : vector<1x128xi1> to vector<1x128xi1>
    %53 = vector.broadcast %52 : vector<1x128xi1> to vector<8x128xi1>
    %54 = arith.select %53, %50, %51 : vector<8x128xi1>, vector<8x128xf32>
    %55 = tpu.concatenate %49, %44, %54 in 0 : vector<8x128xf32>, vector<8x128xf32>, vector<8x128xf32> -> vector<24x128xf32>
    %cst_30 = arith.constant dense<0.000000e+00> : vector<8x128xf32>
    %56 = tpu.matmul %20, %55, %cst_30 {dimension_numbers = #tpu.dot_dimension_numbers<[1], [0], [0], [1], [0, 0, 1, 1], [], []>} : vector<8x24xf32>, vector<24x128xf32>, vector<8x128xf32> -> vector<8x128xf32>
    %57 = vector.broadcast %22 : vector<8x1xf32> to vector<8x128xf32>
    %58 = arith.addf %56, %57 : vector<8x128xf32>
    %cst_31 = arith.constant 0.000000e+00 : f32
    %59 = vector.broadcast %cst_31 : f32 to vector<8x128xf32>
    %60 = arith.maximumf %58, %59 : vector<8x128xf32>
    %cst_32 = arith.constant dense<0.000000e+00> : vector<8x128xf32>
    %61 = tpu.matmul %25, %28, %cst_32 {dimension_numbers = #tpu.dot_dimension_numbers<[1], [0], [0], [1], [0, 0, 1, 1], [], []>} : vector<8x8xf32>, vector<8x128xf32>, vector<8x128xf32> -> vector<8x128xf32>
    %62 = vector.broadcast %26 : vector<8x1xf32> to vector<8x128xf32>
    %63 = arith.addf %61, %62 : vector<8x128xf32>
    %64 = arith.addf %60, %63 : vector<8x128xf32>
    %cst_33 = arith.constant dense<0.000000e+00> : vector<128xf32>
    %65 = vector.multi_reduction <add>, %64, %cst_33 [0] : vector<8x128xf32> to vector<128xf32>
    %66 = vector.shape_cast %65 : vector<128xf32> to vector<1x128xf32>
    %cst_34 = arith.constant 8.000000e+00 : f32
    %67 = vector.broadcast %cst_34 : f32 to vector<1x128xf32>
    %68 = arith.divf %66, %67 : vector<1x128xf32>
    %69 = vector.broadcast %68 : vector<1x128xf32> to vector<8x128xf32>
    %70 = arith.subf %64, %69 : vector<8x128xf32>
    %71 = arith.mulf %70, %70 : vector<8x128xf32>
    %cst_35 = arith.constant dense<0.000000e+00> : vector<128xf32>
    %72 = vector.multi_reduction <add>, %71, %cst_35 [0] : vector<8x128xf32> to vector<128xf32>
    %73 = vector.shape_cast %72 : vector<128xf32> to vector<1x128xf32>
    %cst_36 = arith.constant 8.000000e+00 : f32
    %74 = vector.broadcast %cst_36 : f32 to vector<1x128xf32>
    %75 = arith.divf %73, %74 : vector<1x128xf32>
    %cst_37 = arith.constant 9.99999974E-6 : f32
    %76 = vector.broadcast %cst_37 : f32 to vector<1x128xf32>
    %77 = arith.addf %75, %76 : vector<1x128xf32>
    %78 = math.rsqrt %77 : vector<1x128xf32>
    %79 = vector.broadcast %23 : vector<8x1xf32> to vector<8x128xf32>
    %80 = vector.broadcast %78 : vector<1x128xf32> to vector<8x128xf32>
    %81 = arith.mulf %79, %80 : vector<8x128xf32>
    %82 = vector.broadcast %68 : vector<1x128xf32> to vector<8x128xf32>
    %83 = arith.subf %64, %82 : vector<8x128xf32>
    %84 = arith.mulf %83, %81 : vector<8x128xf32>
    %85 = vector.broadcast %24 : vector<8x1xf32> to vector<8x128xf32>
    %86 = arith.addf %84, %85 : vector<8x128xf32>
    %c0_38 = arith.constant 0 : index
    %c0_39 = arith.constant 0 : index
    %c0_40 = arith.constant 0 : index
    %87 = vector.load %arg10[%c0_38, %c0_39, %c0_40] : memref<1x8x128xf32, #tpu.memory_space<vmem>>, vector<1x8x128xf32>
    %88 = vector.shape_cast %87 : vector<1x8x128xf32> to vector<8x128xf32>
    %89 = vector.shape_cast %86 : vector<8x128xf32> to vector<1x8x128xf32>
    tpu.vector_store %arg10[%c0_38, %c0_39, %c0_40], %89 {strides = array<i32>} : memref<1x8x128xf32, #tpu.memory_space<vmem>>, vector<1x8x128xf32>,
    return
  }
  func.func @transform_0(%arg0: i32) -> (i32, i32, i32) {
    %c0_i32 = arith.constant 0 : i32
    %c0_i32_0 = arith.constant 0 : i32
    %c0_i32_1 = arith.constant 0 : i32
    return %arg0, %c0_i32, %c0_i32_0 : i32, i32, i32
  }
  func.func @transform_1(%arg0: i32) -> (i32, i32) {
    %c0_i32 = arith.constant 0 : i32
    %c0_i32_0 = arith.constant 0 : i32
    %c0_i32_1 = arith.constant 0 : i32
    return %c0_i32, %c0_i32_0 : i32, i32
  }
  func.func @transform_2(%arg0: i32) -> (i32, i32) {
    %c0_i32 = arith.constant 0 : i32
    %c0_i32_0 = arith.constant 0 : i32
    %c0_i32_1 = arith.constant 0 : i32
    return %c0_i32, %c0_i32_0 : i32, i32
  }
  func.func @transform_3(%arg0: i32) -> (i32, i32) {
    %c0_i32 = arith.constant 0 : i32
    %c0_i32_0 = arith.constant 0 : i32
    %c0_i32_1 = arith.constant 0 : i32
    return %c0_i32, %c0_i32_0 : i32, i32
  }
  func.func @transform_4(%arg0: i32) -> (i32, i32) {
    %c0_i32 = arith.constant 0 : i32
    %c0_i32_0 = arith.constant 0 : i32
    %c0_i32_1 = arith.constant 0 : i32
    return %c0_i32, %c0_i32_0 : i32, i32
  }
  func.func @transform_5(%arg0: i32) -> (i32, i32) {
    %c0_i32 = arith.constant 0 : i32
    %c0_i32_0 = arith.constant 0 : i32
    %c0_i32_1 = arith.constant 0 : i32
    return %c0_i32, %c0_i32_0 : i32, i32
  }
  func.func @transform_6(%arg0: i32) -> (i32, i32) {
    %c0_i32 = arith.constant 0 : i32
    %c0_i32_0 = arith.constant 0 : i32
    %c0_i32_1 = arith.constant 0 : i32
    return %c0_i32, %c0_i32_0 : i32, i32
  }
  func.func @transform_7(%arg0: i32) -> (i32, i32) {
    %c0_i32 = arith.constant 0 : i32
    %c0_i32_0 = arith.constant 0 : i32
    %c0_i32_1 = arith.constant 0 : i32
    return %c0_i32, %c0_i32_0 : i32, i32
  }
  func.func @transform_8(%arg0: i32) -> (i32, i32) {
    %c0_i32 = arith.constant 0 : i32
    %c0_i32_0 = arith.constant 0 : i32
    %c0_i32_1 = arith.constant 0 : i32
    return %c0_i32, %c0_i32_0 : i32, i32
  }
  func.func @transform_9(%arg0: i32) -> (i32, i32, i32) {
    %c0_i32 = arith.constant 0 : i32
    %c0_i32_0 = arith.constant 0 : i32
    %c0_i32_1 = arith.constant 0 : i32
    return %arg0, %c0_i32, %c0_i32_0 : i32, i32, i32
  }
}

</mosaic_0001>

<bundles_post_ra>
// kernel: tpu_custom_call.1
= control target key start
LH: loop header
LB: loop body
LE: loop exit
PB: predicated region body
PF: predicated region fallthrough
CT: control target
= control target key end

     0   :  { %14 = vsyncpa [#allocation3], 0  ;;  %s1079_s0 = inlined_call_operand.vmem [shape: f32[2,8,128], index: 0, kind: input, shape index: {}]   ;;  %s1080_s1 = inlined_call_operand.vmem [shape: f32[8,24], index: 1, kind: input, shape index: {}]   ;;  %s1081_s2 = inlined_call_operand.vmem [shape: f32[8,1], index: 2, kind: input, shape index: {}]   ;;  %s1082_s3 = inlined_call_operand.vmem [shape: f32[8,24], index: 3, kind: input, shape index: {}]   ;;  %s1083_s4 = inlined_call_operand.vmem [shape: f32[8,1], index: 4, kind: input, shape index: {}]   ;;  %s1084_s5 = inlined_call_operand.vmem [shape: f32[8,8], index: 5, kind: input, shape index: {}]   ;;  %s1085_s6 = inlined_call_operand.vmem [shape: f32[8,1], index: 6, kind: input, shape index: {}]   ;;  %s1086_s7 = inlined_call_operand.vmem [shape: f32[8,1], index: 7, kind: input, shape index: {}]   ;;  %s1087_s8 = inlined_call_operand.vmem [shape: f32[8,1], index: 8, kind: input, shape index: {}]   ;;  %s1088_s9 = inlined_call_operand.hbm [shape: f32[2,8,128], index: 9, kind: output, shape index: {}]  }
   0x1   :  { %16 = vsyncpa [#allocation3 + $0x1], 0  ;;  %s938_s30 = smov 0   ;;  %s940_s10 = smov 0  }
   0x2   :  { %s942_s11 = smov 0   ;;  %s944_s12 = smov 0  }
   0x3 LB: > { %s959_s13 = sadd.s32 4294967295, %s878_s12   ;;  %s708_s14 = sadd.s32 4294967294, %s878_s12   ;;  %s878_s12 = sphi %s944_s12, %s1096_s12   ;;  %s874_s11 = sphi %s942_s11, %s1095_s11   ;;  %s870_s10 = sphi %s940_s10, %s1094_s10   ;;  %s866_s30 = sphi %s938_s30, %s1093_s30  }
   0x4   : > { %s963_s15 = sadd.s32 1, %s878_s12   ;;  %s223_s16 = sadd.s32 1, %s874_s11 }
   0x5   : > { %s220_s17 = ssub.s32 %s878_s12, %s963_s15  ;;  %p233_p0 = scmp.ne.s32.totalorder %s874_s11, %s870_s10 }
   0x6   : > { %p221_p1 = scmp.eq.s32.totalorder %s220_s17, 0  ;;  %p234_p2 = scmp.eq.s32.totalorder %s959_s13, 1 }
   0x7   : > { %p239_p3 = scmp.ne.s32.totalorder %s870_s10, %s866_s30  ;;  %p240_p4 = scmp.eq.s32.totalorder %s708_s14, 1 }
   0x8   : > { %s974_s18 = scalar_select %p221_p1, %s874_s11, %s223_s16  }
   0x9   : > { %p976_p5 = por %p234_p2, %p233_p0  ;;  %p980_p6 = por %p240_p4, %p239_p3 }
   0xa   : > { %p711_p7 = scmp.ge.s32.totalorder %s878_s12, 1  ;;  %p289_p8 = scmp.lt.s32.totalorder %s878_s12, 3 }
   0xc   : > { %p290_p9 = pnand %p711_p7, %p289_p8 }
   0xd   : > { %p324_p10 = scmp.lt.s32.totalorder (!%p290_p9), %s959_s13, 1  ;;  %v880_v0 = vmov (!%p290_p9), 0.0|0.0   ;;  %v340_v1 = vld [vmem:[%s1081_s2] sm:$0xff] (!%p290_p9)  ;;  %vm881_vm0 = vmmov (!%p290_p9), 0   ;;  %v882_v2 = vmov (!%p290_p9), 0.0   ;;  %v883_v3 = vmov (!%p290_p9), 0  }
   0xe   : > { %293 = sbr.rel (%p290_p9) target bundleno = 769 (0x301), region = 56  ;;  %758 = vmatprep.subr.bf16.mxu0 (!%p290_p9), %v880_v0  ;;  %762 = vmatprep.subr.bf16.mxu1 (!%p290_p9), %v880_v0  ;;  %s884_s28 = smov (!%p290_p9), 1   ;;  %v328_v5 = vlaneseq (!%p290_p9)  ;;  %vm886_vm2 = vmmov (!%p290_p9), 1   ;;  %v338_v13 = vld [vmem:[%s1080_s1] sm:$0xff] (!%p290_p9)  ;;  %vm362_vm5 = vcmask (!%p290_p9), 195584   ;;  %vm527_vm6 = vcmask (!%p290_p9), 64512  }
   0xf   : > { %741 = vmatprep.mubr.msk.f32.mxu0 (!%p290_p9), %vm881_vm0, %v882_v2  ;;  %812 = vset.pattern.permute.xlu1 (!%p290_p9), %v883_v3  ;;  %s885_s29 = smov (!%p290_p9), 127   ;;  %v344_v15 = vld [vmem:[%s1084_s5] sm:$0xff] (!%p290_p9)  ;;  %s321_s17 = sand.u32 (!%p290_p9), 1, %s870_s10  }
  0x10   : > { %359 = vperm.xlu1 (!%p290_p9), %812, %v340_v1   ;;  %750 = vmatprep.mubr.msk.f32.mxu1 (!%p290_p9), %vm881_vm0, %v882_v2  ;;  %v329_v6 = vand.u32 (!%p290_p9), 127, %v328_v5  ;;  %v341_v20 = vld [vmem:[%s1083_s4] sm:$0xff] (!%p290_p9)  ;;  %s712_s21 = sshll.u32 (!%p290_p9), %s321_s17, 3  ;;  %s722_s22 = sshll.u32 (!%p290_p9), %s959_s13, 7 }
  0x11   : > { %813 = vset.pattern.permute.xlu0 (!%p290_p9), %v883_v3  ;;  %v342_v21 = vld [vmem:[%s1086_s7] sm:$0xff] (!%p290_p9)  ;;  %s636_s14 = scalar_lea.sflag (!%p290_p9), [#allocation3], %s321_s17 }
  0x12   : > { %v330_v7 = vadd.s32 (!%p290_p9), 4294967295, %v329_v6  ;;  %v334_v10 = vadd.s32 (!%p290_p9), 1, %v329_v6  ;;  %v343_v22 = vld [vmem:[%s1087_s8] sm:$0xff] (!%p290_p9) }
  0x13   : > { %v345_v23 = vld [vmem:[%s1085_s6] sm:$0xff] (!%p290_p9) }
  0x14   : > { %vm331_vm1 = vcmp.ge.s32.totalorder (!%p290_p9), %v330_v7, 0  ;;  %vm336_vm4 = vcmp.lt.s32.totalorder (!%p290_p9), %v334_v10, 128  ;;  %v339_v26 = vld [vmem:[%s1082_s3] sm:$0xff] (!%p290_p9) }
  0x15   : > { %s325_s23 = scalar_select %p324_p10, %s959_s13, 1  ;;  %vm997_vm3 = vmpackc.low %vm886_vm2, %vm331_vm1 }
  0x16   : > { %s887_s13 = smov [#allocation2]  }
  0x17   : > { %s713_s24 = sshll.u32 %s325_s23, 3  ;;  %s323_s23 = scalar_lea.vmem [#allocation2], %s712_s21 }
  0x18   : > { %s327_s27 = scalar_lea.vmem %s1079_s0, %s713_s24  ;;  %s649_s24 = sshll.u32 %s323_s23, 4  ;;  %s1039_s24 = int_to_ptr.vmem [resolvable:$true] %s649_s24 }
  0x19   : > { %v346_v4 = vld [vmem:[%s327_s27] sm:$0xff]  ;;  %s1037_s27 = scalar_lea.hbm %s1088_s9, %s722_s22  ;;  %s816_s16 = scalar_lea.vmem %s1039_s24, 128 }
  0x1a   : > { %347 = vrot.lane.b32.xlu0 %v346_v4, %s884_s28  ;;  %p817_p11 = scmp.ne.s32.totalorder %s1039_s24, %s816_s16 }
  0x1c   : > { %p818_p12 = pnand %p817_p11, %p976_p5 }
  0x1e   : > { %352 = vrot.lane.b32.xlu0 %v346_v4, %s885_s29  ;;  %p819_p13 = pneg %p818_p12 }
  0x8c   : > { %v348_v8 = vpop.permute.xlu0 %347 }
  0x8d   : > { %v759_v11 = vpack.c.bf16 %v346_v4, %v348_v8 }
  0x8f   : > { %761 = vmatpush3.bf16.msk.msra.mxu0 %vm997_vm3, %v759_v11  ;;  %v360_v14 = vpop.permute.xlu1 %359 }
  0x90   : > { %739 = vmatprep.subr.mxu0 %v882_v2  ;;  %v353_v12 = vpop.permute.xlu0 %352 }
  0x93   : > { %740 = vmatpush3.msk.msra.mxu0 %vm336_vm4, %v353_v12 }
  0x94   : > { %742 = vmatmul.mubr.msk.f32.vlgmr.msra.gmra.mrb[0].mxu0 %vm362_vm5, %v338_v13  ;;  %753 = vmatprep.subr.mxu0 %v882_v2 }
  0x95   : > { %754 = vmatpush3.msra.mxu0 %v346_v4  ;;  %755 = vmatprep.mubr.msk.f32.mxu0 %vm881_vm0, %v882_v2 }
  0x98   : > { %756 = vmatmul.mubr.msk.f32.vlgmr.msra.gmra.mrb[2].mxu0 %vm527_vm6, %v344_v15 }
 0x167   : > { %v432_v16 = vpop.f32.mrb[0].mxu0 }
 0x168   : > { %v433_v17 = vadd.f32 %v432_v16, %v360_v14  ;;  %v743_v18 = vpop.f32.mrb[1].mxu0 }
 0x16a   : > { %v436_v19 = vmax.f32 %v433_v17, 0.0 }
 0x16b   : > { %v597_v28 = vpop.f32.mrb[2].mxu0 }
 0x16c   : > { %440 = vrot.lane.b32.xlu0 %v436_v19, %s885_s29  ;;  %437 = vrot.lane.b32.xlu1 %v436_v19, %s884_s28  ;;  %v757_v29 = vpop.f32.mrb[3].mxu0  ;;  %s820_s28 = sshll.u32 %s887_s13, 4  ;;  %s821_s28 = int_to_ptr.vmem [resolvable:$false] %s820_s28 }
 0x16d   : > { %s822_s29 = scalar_lea.vmem %s821_s28, 256  ;;  %p823_p0 = scmp.lt.s32.totalorder %s1039_s24, %s821_s28 }
 0x16e   : > { %p824_p1 = scmp.lt.s32.totalorder %s822_s29, %s816_s16 }
 0x170   : > { %445 = vperm.xlu1 %812, %v341_v20   ;;  %524 = vperm.xlu0 %813, %v345_v23   ;;  %p825_p2 = por %p824_p1, %p823_p0 }
 0x172   : > { %p826_p3 = pnand %p825_p2, %p819_p13 }
 0x174   : > { %623 = vperm.xlu1 %812, %v342_v21  }
 0x178   : > { %630 = vperm.xlu1 %812, %v343_v22  }
 0x1de   : > { %v438_v24 = vpop.permute.xlu1 %437  ;;  %v441_v27 = vpop.permute.xlu0 %440 }
 0x1df   : > { %v763_v25 = vpack.c.bf16 %v436_v19, %v438_v24 }
 0x1e1   : > { %765 = vmatpush3.bf16.msk.msra.mxu1 %vm997_vm3, %v763_v25 }
 0x1e2   : > { %748 = vmatprep.subr.mxu1 %v882_v2 }
 0x1e5   : > { %749 = vmatpush3.msk.msra.mxu1 %vm336_vm4, %v441_v27 }
 0x1e6   : > { %751 = vmatmul.mubr.msk.f32.vlgmr.msra.gmra.mrb[0].mxu1 %vm362_vm5, %v339_v26 }
 0x1ef   : > { %v525_v30 = vpop.permute.xlu0 %524  ;;  %v446_v31 = vpop.permute.xlu1 %445 }
 0x1f0   : > { %v598_v35 = vadd.f32 %v597_v28, %v525_v30 }
 0x1f3   : > { %v624_v55 = vpop.permute.xlu1 %623 }
 0x1f7   : > { %v631_v59 = vpop.permute.xlu1 %630 }
 0x2b9   : > { %v517_v32 = vpop.f32.mrb[0].mxu1 }
 0x2ba   : > { %v518_v33 = vadd.f32 %v517_v32, %v446_v31  ;;  %v752_v34 = vpop.f32.mrb[1].mxu1 }
 0x2bc   : > { %v521_v36 = vmax.f32 %v518_v33, 0.0 }
 0x2be   : > { %v601_v37 = vadd.f32 %v598_v35, %v521_v36 }
 0x2c0   : > { %v602_v38 = vrot.slane %v601_v37, 4 }
 0x2c2   : > { %v603_v39 = vadd.f32 %v602_v38, %v601_v37 }
 0x2c4   : > { %v604_v40 = vrot.slane %v603_v39, 2 }
 0x2c6   : > { %v605_v41 = vadd.f32 %v604_v40, %v603_v39 }
 0x2c8   : > { %v606_v42 = vrot.slane %v605_v41, 1 }
 0x2ca   : > { %v607_v43 = vadd.f32 %v606_v42, %v605_v41 }
 0x2cc   : > { %v609_v44 = vmul.f32 0.125, %v607_v43 }
 0x2ce   : > { %v610_v45 = vsub.f32 %v601_v37, %v609_v44 }
 0x2d0   : > { %v611_v46 = vmul.f32 %v610_v45, %v610_v45 }
 0x2d2   : > { %v612_v47 = vrot.slane %v611_v46, 4 }
 0x2d4   : > { %v613_v48 = vadd.f32 %v612_v47, %v611_v46 }
 0x2d6   : > { %v614_v49 = vrot.slane %v613_v48, 2 }
 0x2d8   : > { %v615_v50 = vadd.f32 %v614_v49, %v613_v48 }
 0x2da   : > { %v616_v51 = vrot.slane %v615_v50, 1 }
 0x2dc   : > { %v617_v52 = vadd.f32 %v616_v51, %v615_v50 }
 0x2de   : > { %v618_v53 = vmul.f32 0.125, %v617_v52 }
 0x2e0   : > { %v619_v54 = vadd.f32 1e-05, %v618_v53 }
 0x2e2   : > { %814 = vrsqrt.f32 %v619_v54 }
 0x2ec   : > { %v815_v56 = vpop.eup %814 }
 0x2ed   : > { %v626_v57 = vmul.f32 %v815_v56, %v624_v55 }
 0x2ef   : > { %v627_v58 = vmul.f32 %v626_v57, %v610_v45 }
 0x2f1   : > { %v633_v60 = vadd.f32 %v631_v59, %v627_v58 }
 0x2f3   : > { %634 = vst [vmem:[%s323_s23] sm:$0xff] %v633_v60 }
 0x2f4   : > { %829 = shalt.err (!%p826_p3)
}
 0x2f5   : > { %s830_s17 = scalar_lea.hbm %s1037_s27, 128  ;;  %s834_s23 = scalar_lea.hbm %s1088_s9, 256 }
 0x2f6   : > { %p831_p4 = scmp.ne.s32.totalorder %s1037_s27, %s830_s17  ;;  %p835_p9 = scmp.lt.u32.totalorder %s1037_s27, %s1088_s9 }
 0x2f7   : > { %p836_p10 = scmp.lt.u32.totalorder %s834_s23, %s830_s17  ;;  %p838_p12 = scmp.lt.u32.totalorder %s830_s17, %s1037_s27 }
 0x2f8   : > { %p832_p7 = pnand %p831_p4, %p976_p5 }
 0x2f9   : > { %p837_p11 = por %p836_p10, %p835_p9 }
 0x2fa   : > { %p833_p8 = pneg %p832_p7 }
 0x2fb   : > { %p839_p13 = por %p838_p12, %p837_p11 }
 0x2fd   : > { %p840_p0 = pnand %p839_p13, %p833_p8 }
 0x2ff   : > { %843 = shalt.err (!%p840_p0)
}
 0x300   : > { %766 = dma.vmem_to_hbm [thread:$0]  (%p976_p5), %s1039_s24, 128, %s1037_s27, %s636_s14  }
 0x301 PF: > { %p772_p1 = scmp.ge.s32.totalorder %s878_s12, 2  ;;  %s661_s16 = sand.u32 1, %s866_s30  }
 0x302   : > { %s662_s13 = scalar_lea.sflag [#allocation3], %s661_s16 }
 0x303   : > { %p769_p2 = pnand %p772_p1, %p980_p6 }
 0x305   : > { %861 = dma.done.wait (!%p769_p2), %s662_s13, 128  }
 0x306   : > { %863 = vsyncadd (!%p769_p2), %s662_s13, 4294967168  ;;  %p19_p3 = scmp.ge.s32.totalorder %s963_s15, 4   ;;  %s1093_s30 = smov %s870_s10 }
 0x307   : > { %s1094_s10 = smov %s874_s11  ;;  %s1095_s11 = smov %s974_s18 }
 0x308   : > { %s1096_s12 = smov %s963_s15  ;;  %21 = sbr.rel (!%p19_p3) target bundleno = 3 (0x3), region = 91 }
 0x30f   :  { %667 = vsyncpa [#allocation3], 1 }
 0x310   :  { %669 = vsyncpa [#allocation3 + $0x1], 1 }

</bundles_post_ra>
